<compile_context>
chip_gen: v5e
topology: v5e:2x2
jax: 0.10.0
libtpu: 0.0.40
codegen_flags: <defaults>
</compile_context>

<pallas_src>
import functools

import jax
import jax.numpy as jnp
from jax.experimental import pallas as pl
from jax.experimental.pallas import tpu as pltpu


def _bottleneck_kernel(x_ref, mask_ref, s1_ref, b1_ref, w1_ref, b2_ref, w2_ref,
                       out_ref, col_ref, *, width):
    # x_ref:   (1, Cin, HW)     one batch element, channels on sublanes
    # mask_ref:(2, HW)          f32 {0,1} W-boundary masks (row0: w!=0, row1: w!=W-1)
    # s1/b1:   (Cin, 1)         folded BN1 scale / bias
    # w1_ref:  (Czip, Cin)      1x1 conv weight with BN2 scale folded in (bf16)
    # b2_ref:  (Czip, 1)        folded BN2 bias
    # w2_ref:  (Cg, 9*Czip)     3x3 conv weight, im2col column order (bf16)
    # out_ref: (1, Cg+Cin, HW)  fused output: [conv3x3 ; x]
    # col_ref: (9*Czip, HW)     bf16 VMEM im2col scratch
    Cin, HW = x_ref.shape[1], x_ref.shape[2]
    Czip = w1_ref.shape[0]
    W = width

    xf = x_ref[0]                                         # (Cin, HW) f32

    # BN1 (folded, eval mode) + ReLU -- keep f32 on the VPU.
    t = jnp.maximum(xf * s1_ref[...] + b1_ref[...], 0.0)

    # 1x1 conv (BN2 scale already folded into w1): bf16 MXU, f32 acc, N = HW.
    y = jnp.dot(w1_ref[...], t.astype(jnp.bfloat16),
                preferred_element_type=jnp.float32)       # (Czip, HW)

    # BN2 bias + ReLU.
    z = jnp.maximum(y + b2_ref[...], 0.0)                 # (Czip, HW) f32

    # Zero-pad the flattened-spatial LANE axis (handles the H boundary of the
    # "same" 3x3 conv).  Pad is a multiple of 128 so z stays lane-tile aligned.
    pad = ((W + 1 + 127) // 128) * 128
    zeros = jnp.zeros((Czip, pad), z.dtype)
    zp = jnp.concatenate([zeros, z, zeros], axis=1)       # (Czip, HW + 2*pad)

    # W-boundary masks: a +-1 lane shift wraps into the neighbouring row, so
    # those pixels must be zeroed for the dw=0 / dw=2 taps (masking in f32).
    ml = mask_ref[0:1, :]                                 # 0 where w == 0
    mr = mask_ref[1:2, :]                                 # 0 where w == W-1

    # im2col: 9 lane-shifted views -> one (9*Czip, HW) bf16 buffer.  Each store
    # is sublane-aligned (offset = tap_idx*Czip) and full lane width (unmasked),
    # cast to bf16 at write time.
    for dh in range(3):
        for dw in range(3):
            tap_idx = dh * 3 + dw
            off = pad + (dh - 1) * W + (dw - 1)
            tap = jax.lax.slice(zp, (0, off), (Czip, off + HW))
            if dw == 0:
                tap = tap * ml
            elif dw == 2:
                tap = tap * mr
            col_ref[tap_idx * Czip:(tap_idx + 1) * Czip, :] = (
                tap.astype(jnp.bfloat16))

    # 3x3 conv as ONE K = 9*Czip matmul (bf16 MXU, f32 accumulate, N = HW).
    conv = jnp.dot(w2_ref[...], col_ref[...],
                   preferred_element_type=jnp.float32)    # (Cg, HW)

    # Fused channel concat torch.cat([out, x], 1): single lane-dense store of
    # the (Cout, HW) block (sublane concat at offsets 0 / Cg is aligned).
    out_ref[0, :, :] = jnp.concatenate([conv, xf], axis=0).astype(out_ref.dtype)


def bottleneck_forward(x, params):
    """x: (N, Cin, H, W) NCHW float32. Returns (N, Cg + Cin, H, W)."""
    s1, b1, w1, b2, w2 = params
    N, Cin, H, W = x.shape
    Czip = w1.shape[0]
    Cg = w2.shape[0]
    HW = H * W
    Cout = Cg + Cin

    # Precompute the W-boundary masks for the padding=1 3x3 conv (f32 {0,1}).
    w_idx = jnp.arange(HW, dtype=jnp.int32) % W
    masks = jnp.stack([(w_idx != 0), (w_idx != W - 1)], axis=0).astype(x.dtype)

    x_flat = x.reshape(N, Cin, HW)   # contiguous in NCHW, free

    out_flat = pl.pallas_call(
        functools.partial(_bottleneck_kernel, width=W),
        out_shape=jax.ShapeDtypeStruct((N, Cout, HW), x.dtype),
        grid_spec=pltpu.PrefetchScalarGridSpec(
            num_scalar_prefetch=0,
            grid=(N,),
            in_specs=[
                pl.BlockSpec((1, Cin, HW), lambda n: (n, 0, 0)),
                pl.BlockSpec((2, HW), lambda n: (0, 0)),
                pl.BlockSpec((Cin, 1), lambda n: (0, 0)),
                pl.BlockSpec((Cin, 1), lambda n: (0, 0)),
                pl.BlockSpec((Czip, Cin), lambda n: (0, 0)),
                pl.BlockSpec((Czip, 1), lambda n: (0, 0)),
                pl.BlockSpec((Cg, 9 * Czip), lambda n: (0, 0)),
            ],
            out_specs=pl.BlockSpec((1, Cout, HW), lambda n: (n, 0, 0)),
            scratch_shapes=[pltpu.VMEM((9 * Czip, HW), jnp.bfloat16)],
        ),
        # "parallel" batch axis: lets v7x split the (even) grid across its 2
        # TensorCores; neutral on v5e/v6e.  VMEM per step is far under every
        # default scoped limit at these shapes, so no override is needed.
        compiler_params=pltpu.CompilerParams(
            dimension_semantics=("parallel",)),
    )(x_flat, masks, s1, b1, w1, b2, w2)

    return out_flat.reshape(N, Cout, H, W)


def init_raw_params(key, in_channels, growth_rate):
    """Deterministic synthetic parameters in PyTorch layout."""
    zip_channels = 4 * growth_rate
    ks = jax.random.split(key, 10)
    gamma1 = jax.random.uniform(ks[0], (in_channels,), minval=0.5, maxval=1.5)
    beta1 = 0.1 * jax.random.normal(ks[1], (in_channels,))
    mean1 = 0.1 * jax.random.normal(ks[2], (in_channels,))
    var1 = jax.random.uniform(ks[3], (in_channels,), minval=0.5, maxval=1.5)
    w1_oi = 0.1 * jax.random.normal(ks[4], (zip_channels, in_channels))
    gamma2 = jax.random.uniform(ks[5], (zip_channels,), minval=0.5, maxval=1.5)
    beta2 = 0.1 * jax.random.normal(ks[6], (zip_channels,))
    mean2 = 0.1 * jax.random.normal(ks[7], (zip_channels,))
    var2 = jax.random.uniform(ks[8], (zip_channels,), minval=0.5, maxval=1.5)
    w2_oihw = 0.05 * jax.random.normal(ks[9], (growth_rate, zip_channels, 3, 3))
    return (gamma1, beta1, mean1, var1, w1_oi,
            gamma2, beta2, mean2, var2, w2_oihw)


def fold_params(raw, eps=1e-5):
    """Fold eval-mode BN into kernel-ready params; cast conv weights to bf16."""
    (gamma1, beta1, mean1, var1, w1_oi,
     gamma2, beta2, mean2, var2, w2_oihw) = raw
    zip_channels = w1_oi.shape[0]
    growth_rate = w2_oihw.shape[0]

    scale1 = gamma1 / jnp.sqrt(var1 + eps)
    bias1 = beta1 - mean1 * scale1
    scale2 = gamma2 / jnp.sqrt(var2 + eps)
    bias2 = beta2 - mean2 * scale2

    # Fold BN2's scale into the 1x1 conv weight; kernel layout is (Czip, Cin).
    w1 = (w1_oi * scale2[:, None]).astype(jnp.bfloat16)          # (Czip, Cin)
    # 3x3 conv weight in im2col column order: col = (kh*3 + kw)*Czip + c.
    w2 = jnp.transpose(w2_oihw, (0, 2, 3, 1)).reshape(
        growth_rate, 9 * zip_channels).astype(jnp.bfloat16)      # (Cg, 9*Czip)

    return (scale1.reshape(-1, 1).astype(jnp.float32),
            bias1.reshape(-1, 1).astype(jnp.float32),
            w1,
            bias2.reshape(-1, 1).astype(jnp.float32),
            w2)


def reference_forward(x, raw, eps=1e-5):
    """Pure-JAX f32 reference (NCHW) mirroring the PyTorch eval-mode forward."""
    (gamma1, beta1, mean1, var1, w1_oi,
     gamma2, beta2, mean2, var2, w2_oihw) = raw

    def bn(v, g, b, m, s):
        sc = (g / jnp.sqrt(s + eps))[None, :, None, None]
        return (v - m[None, :, None, None]) * sc + b[None, :, None, None]

    t = jnp.maximum(bn(x, gamma1, beta1, mean1, var1), 0.0)
    y = jnp.einsum('nchw,oc->nohw', t, w1_oi)
    z = jnp.maximum(bn(y, gamma2, beta2, mean2, var2), 0.0)
    conv = jax.lax.conv_general_dilated(
        z, w2_oihw, window_strides=(1, 1), padding='SAME',
        dimension_numbers=('NCHW', 'OIHW', 'NCHW'))
    return jnp.concatenate([conv, x], axis=1)


if __name__ == "__main__":
    N, H, W = 2, 16, 16
    in_channels, growth_rate = 16, 8   # zip_channels = 32, output channels = 24

    key = jax.random.PRNGKey(0)
    kx, kp = jax.random.split(key)
    # NCHW input, matching the PyTorch module's native layout.
    x = jax.random.normal(kx, (N, in_channels, H, W), dtype=jnp.float32)
    raw = init_raw_params(kp, in_channels, growth_rate)
    params = fold_params(raw)

    out = jax.block_until_ready(bottleneck_forward(x, params))
    ref = jax.block_until_ready(reference_forward(x, raw))

    assert out.shape == (N, growth_rate + in_channels, H, W), out.shape
    # Tolerance accounts for bf16 MXU operands (f32 accumulation) in the kernel.
    assert jnp.allclose(out, ref, rtol=5e-2, atol=5e-2), (
        float(jnp.max(jnp.abs(out - ref))))

    print("KERNEL_OK")
</pallas_src>

<mosaic_0001>
module attributes {stable_mosaic.version = 11 : i64} {
  func.func @_bottleneck_kernel(%arg0: i32, %arg1: memref<1x16x256xf32, #tpu.memory_space<vmem>>, %arg2: memref<2x256xf32, #tpu.memory_space<vmem>>, %arg3: memref<16x1xf32, #tpu.memory_space<vmem>>, %arg4: memref<16x1xf32, #tpu.memory_space<vmem>>, %arg5: memref<32x16xbf16, #tpu.memory_space<vmem>>, %arg6: memref<32x1xf32, #tpu.memory_space<vmem>>, %arg7: memref<8x288xbf16, #tpu.memory_space<vmem>>, %arg8: memref<1x24x256xf32, #tpu.memory_space<vmem>>, %arg9: memref<288x256xbf16, #tpu.memory_space<vmem>>) attributes {dimension_semantics = [#tpu.dimension_semantics<parallel>], iteration_bounds = array<i64: 2>, scalar_prefetch = 0 : i64, scratch_operands = 1 : i64, tpu.core_type = #tpu.core_type<tc>, window_params = [{transform_indices = @transform_0, window_bounds = array<i64: 1, 16, 256>}, {pipeline_mode = #tpu.pipeline_mode<synchronous>, transform_indices = @transform_1, window_bounds = array<i64: 2, 256>}, {pipeline_mode = #tpu.pipeline_mode<synchronous>, transform_indices = @transform_2, window_bounds = array<i64: 16, 1>}, {pipeline_mode = #tpu.pipeline_mode<synchronous>, transform_indices = @transform_3, window_bounds = array<i64: 16, 1>}, {pipeline_mode = #tpu.pipeline_mode<synchronous>, transform_indices = @transform_4, window_bounds = array<i64: 32, 16>}, {pipeline_mode = #tpu.pipeline_mode<synchronous>, transform_indices = @transform_5, window_bounds = array<i64: 32, 1>}, {pipeline_mode = #tpu.pipeline_mode<synchronous>, transform_indices = @transform_6, window_bounds = array<i64: 8, 288>}, {transform_indices = @transform_7, window_bounds = array<i64: 1, 24, 256>}]} {
    %c0 = arith.constant 0 : index
    %c0_0 = arith.constant 0 : index
    %c0_1 = arith.constant 0 : index
    %0 = vector.load %arg1[%c0, %c0_0, %c0_1] : memref<1x16x256xf32, #tpu.memory_space<vmem>>, vector<1x16x256xf32>
    %1 = vector.shape_cast %0 : vector<1x16x256xf32> to vector<16x256xf32>
    %c0_2 = arith.constant 0 : index
    %c0_3 = arith.constant 0 : index
    %2 = vector.load %arg3[%c0_2, %c0_3] : memref<16x1xf32, #tpu.memory_space<vmem>>, vector<16x1xf32>
    %3 = vector.broadcast %2 : vector<16x1xf32> to vector<16x256xf32>
    %4 = arith.mulf %1, %3 : vector<16x256xf32>
    %c0_4 = arith.constant 0 : index
    %c0_5 = arith.constant 0 : index
    %5 = vector.load %arg4[%c0_4, %c0_5] : memref<16x1xf32, #tpu.memory_space<vmem>>, vector<16x1xf32>
    %6 = vector.broadcast %5 : vector<16x1xf32> to vector<16x256xf32>
    %7 = arith.addf %4, %6 : vector<16x256xf32>
    %cst = arith.constant 0.000000e+00 : f32
    %8 = vector.broadcast %cst : f32 to vector<16x256xf32>
    %9 = arith.maximumf %7, %8 : vector<16x256xf32>
    %c0_6 = arith.constant 0 : index
    %c0_7 = arith.constant 0 : index
    %10 = vector.load %arg5[%c0_6, %c0_7] : memref<32x16xbf16, #tpu.memory_space<vmem>>, vector<32x16xbf16>
    %11 = arith.truncf %9 : vector<16x256xf32> to vector<16x256xbf16>
    %cst_8 = arith.constant dense<0.000000e+00> : vector<32x256xf32>
    %12 = tpu.matmul %10, %11, %cst_8 {dimension_numbers = #tpu.dot_dimension_numbers<[1], [0], [0], [1], [0, 0, 1, 1], [], []>} : vector<32x16xbf16>, vector<16x256xbf16>, vector<32x256xf32> -> vector<32x256xf32>
    %c0_9 = arith.constant 0 : index
    %c0_10 = arith.constant 0 : index
    %13 = vector.load %arg6[%c0_9, %c0_10] : memref<32x1xf32, #tpu.memory_space<vmem>>, vector<32x1xf32>
    %14 = vector.broadcast %13 : vector<32x1xf32> to vector<32x256xf32>
    %15 = arith.addf %12, %14 : vector<32x256xf32>
    %cst_11 = arith.constant 0.000000e+00 : f32
    %16 = vector.broadcast %cst_11 : f32 to vector<32x256xf32>
    %17 = arith.maximumf %15, %16 : vector<32x256xf32>
    %cst_12 = arith.constant 0.000000e+00 : f32
    %18 = vector.broadcast %cst_12 : f32 to vector<32x128xf32>
    %19 = tpu.concatenate %18, %17, %18 in 1 : vector<32x128xf32>, vector<32x256xf32>, vector<32x128xf32> -> vector<32x512xf32>
    %c0_13 = arith.constant 0 : index
    %c0_14 = arith.constant 0 : index
    %20 = vector.load %arg2[%c0_13, %c0_14] : memref<2x256xf32, #tpu.memory_space<vmem>>, vector<1x256xf32>
    %c1 = arith.constant 1 : index
    %c0_15 = arith.constant 0 : index
    %21 = vector.load %arg2[%c1, %c0_15] : memref<2x256xf32, #tpu.memory_space<vmem>>, vector<1x256xf32>
    %22 = vector.extract_strided_slice %19 {offsets = [0, 111], sizes = [32, 256], strides = [1, 1]} : vector<32x512xf32> to vector<32x256xf32>
    %23 = vector.broadcast %20 : vector<1x256xf32> to vector<32x256xf32>
    %24 = arith.mulf %22, %23 : vector<32x256xf32>
    %25 = arith.truncf %24 : vector<32x256xf32> to vector<32x256xbf16>
    %c0_16 = arith.constant 0 : index
    %c0_17 = arith.constant 0 : index
    %26 = vector.load %arg9[%c0_16, %c0_17] : memref<288x256xbf16, #tpu.memory_space<vmem>>, vector<32x256xbf16>
    tpu.vector_store %arg9[%c0_16, %c0_17], %25 {strides = array<i32>} : memref<288x256xbf16, #tpu.memory_space<vmem>>, vector<32x256xbf16>,
    %27 = vector.extract_strided_slice %19 {offsets = [0, 112], sizes = [32, 256], strides = [1, 1]} : vector<32x512xf32> to vector<32x256xf32>
    %28 = arith.truncf %27 : vector<32x256xf32> to vector<32x256xbf16>
    %c32 = arith.constant 32 : index
    %c0_18 = arith.constant 0 : index
    %29 = vector.load %arg9[%c32, %c0_18] : memref<288x256xbf16, #tpu.memory_space<vmem>>, vector<32x256xbf16>
    tpu.vector_store %arg9[%c32, %c0_18], %28 {strides = array<i32>} : memref<288x256xbf16, #tpu.memory_space<vmem>>, vector<32x256xbf16>,
    %30 = vector.extract_strided_slice %19 {offsets = [0, 113], sizes = [32, 256], strides = [1, 1]} : vector<32x512xf32> to vector<32x256xf32>
    %31 = vector.broadcast %21 : vector<1x256xf32> to vector<32x256xf32>
    %32 = arith.mulf %30, %31 : vector<32x256xf32>
    %33 = arith.truncf %32 : vector<32x256xf32> to vector<32x256xbf16>
    %c64 = arith.constant 64 : index
    %c0_19 = arith.constant 0 : index
    %34 = vector.load %arg9[%c64, %c0_19] : memref<288x256xbf16, #tpu.memory_space<vmem>>, vector<32x256xbf16>
    tpu.vector_store %arg9[%c64, %c0_19], %33 {strides = array<i32>} : memref<288x256xbf16, #tpu.memory_space<vmem>>, vector<32x256xbf16>,
    %35 = vector.extract_strided_slice %19 {offsets = [0, 127], sizes = [32, 256], strides = [1, 1]} : vector<32x512xf32> to vector<32x256xf32>
    %36 = vector.broadcast %20 : vector<1x256xf32> to vector<32x256xf32>
    %37 = arith.mulf %35, %36 : vector<32x256xf32>
    %38 = arith.truncf %37 : vector<32x256xf32> to vector<32x256xbf16>
    %c96 = arith.constant 96 : index
    %c0_20 = arith.constant 0 : index
    %39 = vector.load %arg9[%c96, %c0_20] : memref<288x256xbf16, #tpu.memory_space<vmem>>, vector<32x256xbf16>
    tpu.vector_store %arg9[%c96, %c0_20], %38 {strides = array<i32>} : memref<288x256xbf16, #tpu.memory_space<vmem>>, vector<32x256xbf16>,
    %40 = vector.extract_strided_slice %19 {offsets = [0, 128], sizes = [32, 256], strides = [1, 1]} : vector<32x512xf32> to vector<32x256xf32>
    %41 = arith.truncf %40 : vector<32x256xf32> to vector<32x256xbf16>
    %c128 = arith.constant 128 : index
    %c0_21 = arith.constant 0 : index
    %42 = vector.load %arg9[%c128, %c0_21] : memref<288x256xbf16, #tpu.memory_space<vmem>>, vector<32x256xbf16>
    tpu.vector_store %arg9[%c128, %c0_21], %41 {strides = array<i32>} : memref<288x256xbf16, #tpu.memory_space<vmem>>, vector<32x256xbf16>,
    %43 = vector.extract_strided_slice %19 {offsets = [0, 129], sizes = [32, 256], strides = [1, 1]} : vector<32x512xf32> to vector<32x256xf32>
    %44 = vector.broadcast %21 : vector<1x256xf32> to vector<32x256xf32>
    %45 = arith.mulf %43, %44 : vector<32x256xf32>
    %46 = arith.truncf %45 : vector<32x256xf32> to vector<32x256xbf16>
    %c160 = arith.constant 160 : index
    %c0_22 = arith.constant 0 : index
    %47 = vector.load %arg9[%c160, %c0_22] : memref<288x256xbf16, #tpu.memory_space<vmem>>, vector<32x256xbf16>
    tpu.vector_store %arg9[%c160, %c0_22], %46 {strides = array<i32>} : memref<288x256xbf16, #tpu.memory_space<vmem>>, vector<32x256xbf16>,
    %48 = vector.extract_strided_slice %19 {offsets = [0, 143], sizes = [32, 256], strides = [1, 1]} : vector<32x512xf32> to vector<32x256xf32>
    %49 = vector.broadcast %20 : vector<1x256xf32> to vector<32x256xf32>
    %50 = arith.mulf %48, %49 : vector<32x256xf32>
    %51 = arith.truncf %50 : vector<32x256xf32> to vector<32x256xbf16>
    %c192 = arith.constant 192 : index
    %c0_23 = arith.constant 0 : index
    %52 = vector.load %arg9[%c192, %c0_23] : memref<288x256xbf16, #tpu.memory_space<vmem>>, vector<32x256xbf16>
    tpu.vector_store %arg9[%c192, %c0_23], %51 {strides = array<i32>} : memref<288x256xbf16, #tpu.memory_space<vmem>>, vector<32x256xbf16>,
    %53 = vector.extract_strided_slice %19 {offsets = [0, 144], sizes = [32, 256], strides = [1, 1]} : vector<32x512xf32> to vector<32x256xf32>
    %54 = arith.truncf %53 : vector<32x256xf32> to vector<32x256xbf16>
    %c224 = arith.constant 224 : index
    %c0_24 = arith.constant 0 : index
    %55 = vector.load %arg9[%c224, %c0_24] : memref<288x256xbf16, #tpu.memory_space<vmem>>, vector<32x256xbf16>
    tpu.vector_store %arg9[%c224, %c0_24], %54 {strides = array<i32>} : memref<288x256xbf16, #tpu.memory_space<vmem>>, vector<32x256xbf16>,
    %56 = vector.extract_strided_slice %19 {offsets = [0, 145], sizes = [32, 256], strides = [1, 1]} : vector<32x512xf32> to vector<32x256xf32>
    %57 = vector.broadcast %21 : vector<1x256xf32> to vector<32x256xf32>
    %58 = arith.mulf %56, %57 : vector<32x256xf32>
    %59 = arith.truncf %58 : vector<32x256xf32> to vector<32x256xbf16>
    %c256 = arith.constant 256 : index
    %c0_25 = arith.constant 0 : index
    %60 = vector.load %arg9[%c256, %c0_25] : memref<288x256xbf16, #tpu.memory_space<vmem>>, vector<32x256xbf16>
    tpu.vector_store %arg9[%c256, %c0_25], %59 {strides = array<i32>} : memref<288x256xbf16, #tpu.memory_space<vmem>>, vector<32x256xbf16>,
    %c0_26 = arith.constant 0 : index
    %c0_27 = arith.constant 0 : index
    %61 = vector.load %arg7[%c0_26, %c0_27] : memref<8x288xbf16, #tpu.memory_space<vmem>>, vector<8x288xbf16>
    %c0_28 = arith.constant 0 : index
    %c0_29 = arith.constant 0 : index
    %62 = vector.load %arg9[%c0_28, %c0_29] : memref<288x256xbf16, #tpu.memory_space<vmem>>, vector<288x256xbf16>
    %cst_30 = arith.constant dense<0.000000e+00> : vector<8x256xf32>
    %63 = tpu.matmul %61, %62, %cst_30 {dimension_numbers = #tpu.dot_dimension_numbers<[1], [0], [0], [1], [0, 0, 1, 1], [], []>} : vector<8x288xbf16>, vector<288x256xbf16>, vector<8x256xf32> -> vector<8x256xf32>
    %64 = tpu.concatenate %63, %1 in 0 : vector<8x256xf32>, vector<16x256xf32> -> vector<24x256xf32>
    %c0_31 = arith.constant 0 : index
    %c0_32 = arith.constant 0 : index
    %c0_33 = arith.constant 0 : index
    %65 = vector.load %arg8[%c0_31, %c0_32, %c0_33] : memref<1x24x256xf32, #tpu.memory_space<vmem>>, vector<1x24x256xf32>
    %66 = vector.shape_cast %65 : vector<1x24x256xf32> to vector<24x256xf32>
    %67 = vector.shape_cast %64 : vector<24x256xf32> to vector<1x24x256xf32>
    tpu.vector_store %arg8[%c0_31, %c0_32, %c0_33], %67 {strides = array<i32>} : memref<1x24x256xf32, #tpu.memory_space<vmem>>, vector<1x24x256xf32>,
    return
  }
  func.func @transform_0(%arg0: i32) -> (i32, i32, i32) {
    %c0_i32 = arith.constant 0 : i32
    %c0_i32_0 = arith.constant 0 : i32
    %c0_i32_1 = arith.constant 0 : i32
    return %arg0, %c0_i32, %c0_i32_0 : i32, i32, i32
  }
  func.func @transform_1(%arg0: i32) -> (i32, i32) {
    %c0_i32 = arith.constant 0 : i32
    %c0_i32_0 = arith.constant 0 : i32
    %c0_i32_1 = arith.constant 0 : i32
    return %c0_i32, %c0_i32_0 : i32, i32
  }
  func.func @transform_2(%arg0: i32) -> (i32, i32) {
    %c0_i32 = arith.constant 0 : i32
    %c0_i32_0 = arith.constant 0 : i32
    %c0_i32_1 = arith.constant 0 : i32
    return %c0_i32, %c0_i32_0 : i32, i32
  }
  func.func @transform_3(%arg0: i32) -> (i32, i32) {
    %c0_i32 = arith.constant 0 : i32
    %c0_i32_0 = arith.constant 0 : i32
    %c0_i32_1 = arith.constant 0 : i32
    return %c0_i32, %c0_i32_0 : i32, i32
  }
  func.func @transform_4(%arg0: i32) -> (i32, i32) {
    %c0_i32 = arith.constant 0 : i32
    %c0_i32_0 = arith.constant 0 : i32
    %c0_i32_1 = arith.constant 0 : i32
    return %c0_i32, %c0_i32_0 : i32, i32
  }
  func.func @transform_5(%arg0: i32) -> (i32, i32) {
    %c0_i32 = arith.constant 0 : i32
    %c0_i32_0 = arith.constant 0 : i32
    %c0_i32_1 = arith.constant 0 : i32
    return %c0_i32, %c0_i32_0 : i32, i32
  }
  func.func @transform_6(%arg0: i32) -> (i32, i32) {
    %c0_i32 = arith.constant 0 : i32
    %c0_i32_0 = arith.constant 0 : i32
    %c0_i32_1 = arith.constant 0 : i32
    return %c0_i32, %c0_i32_0 : i32, i32
  }
  func.func @transform_7(%arg0: i32) -> (i32, i32, i32) {
    %c0_i32 = arith.constant 0 : i32
    %c0_i32_0 = arith.constant 0 : i32
    %c0_i32_1 = arith.constant 0 : i32
    return %arg0, %c0_i32, %c0_i32_0 : i32, i32, i32
  }
}

</mosaic_0001>

<bundles_post_ra>
// kernel: tpu_custom_call.1
= control target key start
LH: loop header
LB: loop body
LE: loop exit
PB: predicated region body
PF: predicated region fallthrough
CT: control target
= control target key end

     0   :  { %12 = vsyncpa [#allocation4], 0  ;;  %s2361_s0 = inlined_call_operand.hbm [shape: f32[2,16,256], index: 0, kind: input, shape index: {}]   ;;  %s2362_s1 = inlined_call_operand.vmem [shape: f32[2,256], index: 1, kind: input, shape index: {}]   ;;  %s2363_s2 = inlined_call_operand.vmem [shape: f32[16,1], index: 2, kind: input, shape index: {}]   ;;  %s2364_s3 = inlined_call_operand.vmem [shape: f32[16,1], index: 3, kind: input, shape index: {}]   ;;  %s2365_s4 = inlined_call_operand.vmem [shape: bf16[32,16], index: 4, kind: input, shape index: {}]   ;;  %s2366_s5 = inlined_call_operand.vmem [shape: f32[32,1], index: 5, kind: input, shape index: {}]   ;;  %s2367_s6 = inlined_call_operand.vmem [shape: bf16[8,288], index: 6, kind: input, shape index: {}]   ;;  %s2368_s7 = inlined_call_operand.hbm [shape: f32[2,24,256], index: 7, kind: output, shape index: {}]  }
   0x1   :  { %14 = vsyncpa [#allocation4 + $0x1], 0 }
   0x2   :  { %15 = vsyncpa [#allocation5], 0 }
   0x3   :  { %17 = vsyncpa [#allocation5 + $0x1], 0  ;;  %s1782_s24 = smov 0   ;;  %s1784_s25 = smov 0  }
   0x4   :  { %s1786_s26 = smov 0   ;;  %s1788_s27 = smov 0  }
   0x5 LB: > { %s1803_s28 = sadd.s32 4294967295, %s1726_s27   ;;  %s1356_s29 = sadd.s32 4294967294, %s1726_s27   ;;  %s1726_s27 = sphi %s1788_s27, %s2380_s27   ;;  %s1722_s26 = sphi %s1786_s26, %s2379_s26   ;;  %s1718_s25 = sphi %s1784_s25, %s2378_s25   ;;  %s1714_s24 = sphi %s1782_s24, %s2377_s24  }
   0x6   : > { %s1807_s30 = sadd.s32 1, %s1726_s27   ;;  %s30_s8 = sadd.s32 1, %s1722_s26 }
   0x7   : > { %s27_s9 = ssub.s32 %s1726_s27, %s1807_s30  ;;  %p37_p0 = scmp.ne.s32.totalorder %s1722_s26, %s1718_s25 }
   0x8   : > { %p28_p1 = scmp.eq.s32.totalorder %s27_s9, 0  ;;  %p38_p2 = scmp.eq.s32.totalorder %s1726_s27, 0 }
   0x9   : > { %p43_p3 = scmp.ne.s32.totalorder %s1718_s25, %s1714_s24  ;;  %p44_p4 = scmp.eq.s32.totalorder %s1803_s28, 0 }
   0xa   : > { %s1819_s10 = scalar_select %p28_p1, %s1722_s26, %s30_s8  }
   0xb   : > { %p1821_p5 = por %p38_p2, %p37_p0  ;;  %p1825_p6 = por %p44_p4, %p43_p3 }
   0xc   : > { %2369 = sst [smem:[#allocation9_spill]] %s1819_s10  ;;  %p193_p7 = scmp.eq.s32.totalorder %s1803_s28, 1 }
   0xd   : > { %p199_p8 = scmp.eq.s32.totalorder %s1356_s29, 1  ;;  %p1579_p10 = scmp.lt.s32.totalorder %s1726_s27, 2 }
   0xe   : > { %p1832_p11 = por %p193_p7, %p37_p0  ;;  %s237_s15 = sand.u32 1, %s1722_s26  }
   0xf   : > { %p1836_p12 = por %p199_p8, %p43_p3  ;;  %s1526_s16 = sshll.u32 %s1726_s27, 5 }
  0x10   : > { %s1359_s17 = sshll.u32 %s237_s15, 5  ;;  %s246_s20 = scalar_lea.hbm %s2361_s0, %s1526_s16 }
  0x11   : > { %s247_s21 = sshll.u32 %s246_s20, 4  ;;  %s241_s22 = scalar_lea.vmem [#allocation3], %s1359_s17  ;;  %s248_s21 = int_to_ptr.hbm [resolvable:$true] %s247_s21 }
  0x12   : > { %s249_s23 = sshll.u32 %s241_s22, 4  ;;  %p1847_p13 = pnand %p1579_p10, %p1821_p5  ;;  %s250_s23 = int_to_ptr.vmem [resolvable:$true] %s249_s23 }
  0x13   : > { %p1362_p0 = scmp.ge.s32.totalorder %s1726_s27, 1  ;;  %p257_p1 = scmp.lt.s32.totalorder %s1726_s27, 3 }
  0x14   : > { %s238_s8 = scalar_lea.sflag [#allocation4], %s237_s15  ;;  %s1630_s9 = sshra.s32 %s248_s21, 4  ;;  %s1631_s9 = int_to_ptr.hbm [resolvable:$true] %s1630_s9 }
  0x15   : > { %s1632_s10 = scalar_lea.hbm %s1631_s9, 32  ;;  %p1634_p3 = pneg %p1847_p13 }
  0x16   : > { %p1633_p2 = scmp.ne.s32.totalorder %s1631_s9, %s1632_s10  ;;  %s1637_s11 = scalar_lea.hbm %s2361_s0, 64 }
  0x17   : > { %p1638_p5 = scmp.lt.s32.totalorder %s1631_s9, %s2361_s0  ;;  %p1639_p8 = scmp.lt.s32.totalorder %s1637_s11, %s1632_s10 }
  0x18   : > { %p1635_p4 = pnand %p1634_p3, %p1633_p2 }
  0x19   : > { %p1640_p10 = por %p1639_p8, %p1638_p5 }
  0x1a   : > { %p1636_p7 = pneg %p1635_p4 }
  0x1c   : > { %p1641_p9 = pnand %p1640_p10, %p1636_p7 }
  0x1e   : > { %1644 = shalt.err (!%p1641_p9)
}
  0x1f   : > { %s1728_s15 = smov 256   ;;  %s1729_s20 = smov 16  }
  0x20   : > { %1574 = dma.hbm_to_vmem [thread:$0]  (!%p1847_p13), %s248_s21, 512, %s250_s23, %s238_s8, %s1728_s15, %s1728_s15, %s1729_s20  }
  0x21   : > { %p258_p2 = pnand %p1362_p0, %p257_p1 }
  0x22   : > { %s1868_s22 = sand.u32 (!%p258_p2), 1, %s1718_s25  }
  0x23   : > { %261 = sbr.rel (%p258_p2) target bundleno = 701 (0x2bd), region = 48  ;;  %s1363_s10 = sshll.u32 (!%p258_p2), %s1868_s22, 5 }
  0x24   : > { %s264_s9 = scalar_lea.sflag (!%p258_p2), [#allocation4], %s1868_s22  ;;  %s1872_s16 = scalar_lea.vmem (!%p258_p2), [#allocation3], %s1363_s10 }
  0x28   : > { %1705 = dma.done.wait (%p1825_p6), %s264_s9, 512  }
  0x29   : > { %1707 = vsyncadd (%p1825_p6), %s264_s9, 4294966784  ;;  %v1730_v0 = vmov 0   ;;  %v320_v1 = vld [vmem:[%s2364_s3] sm:$0xff]  ;;  %v321_v3 = vld [vmem:[%s2364_s3 + $0x8] sm:$0xff]  ;;  %s1565_s9 = smul.u32 48, %s1868_s22  ;;  %s1731_s8 = smov 15  }
  0x2a   : > { %1628 = vset.pattern.permute.xlu1 %v1730_v0  ;;  %1627 = vset.pattern.permute.xlu0 %v1730_v0  ;;  %v304_v2 = vld [vmem:[%s2363_s2] sm:$0xff]  ;;  %v305_v4 = vld [vmem:[%s2363_s2 + $0x8] sm:$0xff]  ;;  %v302_v12 = vld [vmem:[%s1872_s16 + $0x10] sm:$0xff]  ;;  %s1732_s11 = smov 1   ;;  %s1733_s18 = smov 127   ;;  %v1736_v19 = vmov 0.0|0.0  }
  0x2b   : > { %1629 = vset.pattern.permute.xlu2 %v1730_v0  ;;  %324 = vperm.xlu1 %1628, %v320_v1   ;;  %v347_v5 = vld [vmem:[%s2366_s5 + $0x8] sm:$0xff]  ;;  %v346_v6 = vld [vmem:[%s2366_s5] sm:$0xff]  ;;  %s1902_s29 = scalar_lea.vmem [#allocation6], %s1565_s9  ;;  %v303_v15 = vld [vmem:[%s1872_s16 + $0x18] sm:$0xff]  ;;  %s1734_s20 = smov 17   ;;  %vm380_vm0 = vcmask 130048  }
  0x2c   : > { %308 = vperm.xlu0 %1627, %v304_v2   ;;  %v433_v7 = vld [vmem:[%s2362_s1] ss:$2 sm:$0x3]  ;;  %v301_v10 = vld [vmem:[%s1872_s16 + $0x8] sm:$0xff]  ;;  %1265 = vst [vmem:[%s1902_s29 + $0x20] sm:$0xff] %v302_v12  ;;  %v348_v17 = vld [vmem:[%s2366_s5 + $0x10] sm:$0xff] }
  0x2d   : > { %v300_v8 = vld [vmem:[%s1872_s16] sm:$0xff]  ;;  %v438_v9 = vperm.slane %v433_v7, 1  ;;  %1264 = vst [vmem:[%s1902_s29 + $0x18] sm:$0xff] %v301_v10  ;;  %v437_v14 = vperm.slane %v433_v7, 0  ;;  %362 = vperm.xlu2 %1629, %v348_v17   ;;  %v349_v18 = vld [vmem:[%s2366_s5 + $0x18] sm:$0xff]  ;;  %s1735_s9 = smov 113  }
  0x2e   : > { %1263 = vst [vmem:[%s1902_s29 + $0x10] sm:$0xff] %v300_v8  ;;  %v1376_v11 = vld [vmem:[%s2362_s1 + $0x1] ss:$2 sm:$0x3]  ;;  %s1737_s21 = smov 112   ;;  %s1738_s23 = smov 111  }
  0x2f   : > { %v573_v13 = vperm.slane %v1376_v11, 0  ;;  %1266 = vst [vmem:[%s1902_s29 + $0x28] sm:$0xff] %v303_v15  ;;  %v574_v16 = vperm.slane %v1376_v11, 1  ;;  %v1527_v38 = vld [vmem:[%s2365_s4] sm:$0xff]  ;;  %v1528_v39 = vld [vmem:[%s2365_s4 + $0x8] sm:$0xff]  ;;  %vm634_vm1 = vcmask 121856  }
  0x30   : > { %vm709_vm2 = vcmask 7168   ;;  %vm654_vm3 = vcmask 1039360   ;;  %vm499_vm4 = vcmask 138240   ;;  %vm579_vm5 = vcmask 924672   ;;  %s1740_s16 = smov 16   ;;  %s1566_s10 = smul.u32 48, %s1803_s28 }
  0x31   : > { %vm443_vm6 = vcmask 908288   ;;  %vm497_vm7 = vcmask 1043456   ;;  %vm875_vm8 = vcmask 916480   ;;  %vm1179_vm9 = vcmask 261120   ;;  %s1280_s17 = sshll.u32 %s1902_s29, 4  ;;  %s1268_s28 = scalar_lea.sflag [#allocation5], %s1868_s22  ;;  %s1281_s17 = int_to_ptr.vmem [resolvable:$true] %s1280_s17 }
  0x33   : > { %329 = vperm.xlu1 %1628, %v321_v3  }
  0x34   : > { %313 = vperm.xlu0 %1627, %v305_v4  }
  0x35   : > { %367 = vperm.xlu2 %1629, %v349_v18  }
  0x3b   : > { %357 = vperm.xlu1 %1628, %v347_v5  }
  0x3c   : > { %352 = vperm.xlu0 %1627, %v346_v6  }
  0x3d   : > { %793 = vrot.lane.b32.xlu2 %v437_v14, %s1731_s8 }
  0x43   : > { %733 = vrot.lane.b32.xlu1 %v573_v13, %s1732_s11 }
  0x44   : > { %795 = vrot.lane.b32.xlu0 %v438_v9, %s1731_s8 }
  0x45   : > { %735 = vrot.lane.b32.xlu2 %v574_v16, %s1732_s11 }
  0x4b   : > { %652 = vrot.lane.b32.xlu1 %v438_v9, %s1733_s18 }
  0x4c   : > { %650 = vrot.lane.b32.xlu0 %v437_v14, %s1733_s18 }
  0x4d   : > { %891 = vrot.lane.b32.xlu2 %v573_v13, %s1734_s20 }
  0x53   : > { %575 = vrot.lane.b32.xlu1 %v573_v13, %s1735_s9 }
  0x54   : > { %893 = vrot.lane.b32.xlu0 %v574_v16, %s1734_s20 }
  0x55   : > { %577 = vrot.lane.b32.xlu2 %v574_v16, %s1735_s9 }
  0x5b   : > { %441 = vrot.lane.b32.xlu1 %v438_v9, %s1738_s23 }
  0x5c   : > { %861 = vrot.lane.b32.xlu0 %v1736_v19, %s1737_s21 }
  0x64   : > { %439 = vrot.lane.b32.xlu0 %v437_v14, %s1738_s23 }
  0x87   : > { %v1942_v41 = vpop.permute.xlu2 %362 }
  0x8f   : > { %v1944_v42 = vpop.permute.xlu2 %367 }
  0x97   : > { %v1947_v46 = vpop.permute.xlu2 %793 }
  0x9d   : > { %v325_v20 = vpop.permute.xlu1 %324 }
  0x9e   : > { %v309_v21 = vpop.permute.xlu0 %308 }
  0x9f   : > { %v316_v22 = vmul.f32 %v309_v21, %v300_v8  ;;  %v317_v23 = vmul.f32 %v309_v21, %v301_v10  ;;  %v736_v48 = vpop.permute.xlu2 %735 }
  0xa0   : > { %v744_v49 = vmul.f32 0.0, %v736_v48 }
  0xa1   : > { %v332_v27 = vadd.f32 %v325_v20, %v316_v22  ;;  %v333_v28 = vadd.f32 %v325_v20, %v317_v23 }
  0xa2   : > { %v752_v50 = vpack.c.bf16 %v744_v49, %v744_v49 }
  0xa3   : > { %v336_v32 = vmax.f32 %v332_v27, 0.0  ;;  %v337_v34 = vmax.f32 %v333_v28, 0.0 }
  0xa4   : > { %763 = vrot.lane.b32.xlu0 %v752_v50, %s1733_s18 }
  0xa5   : > { %v330_v29 = vpop.permute.xlu1 %329 }
  0xa6   : > { %v314_v24 = vpop.permute.xlu0 %313 }
  0xa7   : > { %v318_v25 = vmul.f32 %v314_v24, %v302_v12  ;;  %v319_v26 = vmul.f32 %v314_v24, %v303_v15  ;;  %v1951_v55 = vpop.permute.xlu2 %891 }
  0xa9   : > { %v334_v30 = vadd.f32 %v330_v29, %v318_v25  ;;  %v335_v31 = vadd.f32 %v330_v29, %v319_v26 }
  0xab   : > { %v338_v33 = vmax.f32 %v334_v30, 0.0  ;;  %v339_v35 = vmax.f32 %v335_v31, 0.0 }
  0xad   : > { %v344_v36 = vpack.c.bf16 %v338_v33, %v336_v32  ;;  %v345_v37 = vpack.c.bf16 %v339_v35, %v337_v34  ;;  %v358_v54 = vpop.permute.xlu1 %357 }
  0xae   : > { %v353_v40 = vpop.permute.xlu0 %352 }
  0xaf   : > { %394 = vmatpush.bf16.msra.mxu0 %v344_v36  ;;  %413 = vmatpush.bf16.msra.mxu1 %v345_v37  ;;  %v1973_v4 = vpop.permute.xlu2 %577 }
  0xb2   : > { %1372 = vmatmul.msk.bf16.vlgmr.msra.gmra.mxu0 %vm380_vm0, %v1527_v38  ;;  %1374 = vmatmul.msk.bf16.vlgmr.msra.gmra.mxu1 %vm380_vm0, %v1527_v38 }
  0xb5   : > { %v1953_v56 = vpop.permute.xlu1 %733 }
  0xb6   : > { %v796_v43 = vpop.permute.xlu0 %795  ;;  %v1965_v0 = vsel %vm709_vm2, %v1953_v56, %v736_v48 }
  0xb7   : > { %v804_v44 = vmul.f32 0.0, %v796_v43  ;;  %v1961_v63 = vsel %vm634_vm1, %v1947_v46, %v796_v43 }
  0xb9   : > { %v812_v45 = vpack.c.bf16 %v804_v44, %v804_v44 }
  0xbb   : > { %823 = vrot.lane.b32.xlu1 %v812_v45, %s1735_s9 }
  0xbd   : > { %v1979_v7 = vpop.permute.xlu1 %652 }
  0xbe   : > { %v651_v47 = vpop.permute.xlu0 %650 }
  0xbf   : > { %v1984_v12 = vsel %vm654_vm3, %v651_v47, %v1979_v7  ;;  %v1996_v19 = vmul.f32 0.0, %v651_v47 }
  0xc2   : > { %1373 = vmatmul.msk.bf16.gmra.mxu0 %vm380_vm0, %v1528_v39  ;;  %1375 = vmatmul.msk.bf16.gmra.mxu1 %vm380_vm0, %v1528_v39 }
  0xc5   : > { %v576_v38 = vpop.permute.xlu1 %575 }
  0xc6   : > { %v894_v51 = vpop.permute.xlu0 %893  ;;  %v2035_v48 = vmul.f32 0.0, %v576_v38 }
  0xc7   : > { %v902_v52 = vmul.f32 0.0, %v894_v51  ;;  %v2005_v24 = vsel %vm499_vm4, %v1951_v55, %v894_v51 }
  0xc9   : > { %v910_v53 = vpack.c.bf16 %v902_v52, %v902_v52 }
  0xcb   : > { %921 = vrot.lane.b32.xlu0 %v910_v53, %s1738_s23 }
 0x12f   : > { %v396_v57 = vpop.f32.mrf.mxu0  ;;  %v415_v58 = vpop.f32.mrf.mxu1 }
 0x130   : > { %v397_v59 = vadd.f32 %v396_v57, %v353_v40  ;;  %v416_v60 = vadd.f32 %v415_v58, %v353_v40  ;;  %v580_v40 = vsel %vm579_vm5, %v576_v38, %v1973_v4 }
 0x132   : > { %v1955_v61 = vmax.f32 %v397_v59, 0.0  ;;  %v1957_v62 = vmax.f32 %v416_v60, 0.0 }
 0x134   : > { %v725_v1 = vpack.c.bf16 %v1957_v62, %v1955_v61  ;;  %v802_v2 = vmul.f32 %v1947_v46, %v1955_v61  ;;  %v803_v3 = vmul.f32 %v1961_v63, %v1957_v62  ;;  %v742_v5 = vmul.f32 %v1953_v56, %v1955_v61 }
 0x135   : > { %v743_v6 = vmul.f32 %v1965_v0, %v1957_v62  ;;  %v586_v15 = vmul.f32 %v1973_v4, %v1957_v62  ;;  %v661_v18 = vmul.f32 %v1979_v7, %v1957_v62  ;;  %v660_v20 = vmul.f32 %v1984_v12, %v1955_v61 }
 0x136   : > { %859 = vrot.lane.b32.xlu2 %v725_v1, %s1737_s21  ;;  %729 = vst [vmem:[#allocation2 + $0x80] sm:$0xff] %v725_v1  ;;  %v811_v8 = vpack.c.bf16 %v803_v3, %v802_v2  ;;  %v900_v34 = vmul.f32 %v1951_v55, %v1955_v61  ;;  %v901_v35 = vmul.f32 %v2005_v24, %v1957_v62 }
 0x137   : > { %v398_v9 = vpop.f32.mrf.mxu0  ;;  %v417_v10 = vpop.f32.mrf.mxu1  ;;  %v751_v11 = vpack.c.bf16 %v743_v6, %v742_v5  ;;  %v594_v21 = vpack.c.bf16 %v586_v15, %v586_v15  ;;  %v669_v23 = vpack.c.bf16 %v661_v18, %v661_v18  ;;  %v668_v27 = vpack.c.bf16 %v660_v20, %v1996_v19 }
 0x138   : > { %v399_v13 = vadd.f32 %v398_v9, %v358_v54  ;;  %v418_v14 = vadd.f32 %v417_v10, %v358_v54  ;;  %821 = vrot.lane.b32.xlu1 %v811_v8, %s1735_s9  ;;  %v909_v39 = vpack.c.bf16 %v901_v35, %v900_v34  ;;  %v585_v51 = vmul.f32 %v580_v40, %v1955_v61 }
 0x139   : > { %761 = vrot.lane.b32.xlu0 %v751_v11, %s1733_s18 }
 0x13a   : > { %v1990_v16 = vmax.f32 %v399_v13, 0.0  ;;  %v1992_v17 = vmax.f32 %v418_v14, 0.0  ;;  %v593_v54 = vpack.c.bf16 %v585_v51, %v2035_v48 }
 0x13c   : > { %v726_v22 = vpack.c.bf16 %v1992_v17, %v1990_v16  ;;  %v805_v30 = vmul.f32 %v1947_v46, %v1990_v16  ;;  %v806_v31 = vmul.f32 %v1961_v63, %v1992_v17  ;;  %v662_v47 = vmul.f32 %v1984_v12, %v1990_v16 }
 0x13d   : > { %v663_v52 = vmul.f32 %v1979_v7, %v1992_v17  ;;  %v903_v59 = vmul.f32 %v1951_v55, %v1990_v16  ;;  %v904_v1 = vmul.f32 %v2005_v24, %v1992_v17  ;;  %v745_v6 = vmul.f32 %v1953_v56, %v1990_v16 }
 0x13e   : > { %611 = vrot.lane.b32.xlu2 %v594_v21, %s1731_s8  ;;  %730 = vst [vmem:[#allocation2 + $0x88] sm:$0xff] %v726_v22  ;;  %v813_v36 = vpack.c.bf16 %v806_v31, %v805_v30  ;;  %v746_v8 = vmul.f32 %v1965_v0, %v1992_v17  ;;  %v587_v11 = vmul.f32 %v580_v40, %v1990_v16  ;;  %v1739_v21 = vmov 0.0  }
 0x13f   : > { %v401_v25 = vpop.f32.mrf.mxu0  ;;  %v420_v26 = vpop.f32.mrf.mxu1  ;;  %v671_v58 = vpack.c.bf16 %v663_v52, %v663_v52  ;;  %v911_v13 = vpack.c.bf16 %v904_v1, %v903_v59  ;;  %v588_v18 = vmul.f32 %v1973_v4, %v1992_v17  ;;  %v518_v59 = vpack.c.bf16 %v1992_v17, %v1992_v17 }
 0x140   : > { %v402_v28 = vadd.f32 %v401_v25, %v1942_v41  ;;  %v421_v29 = vadd.f32 %v420_v26, %v1942_v41  ;;  %686 = vrot.lane.b32.xlu1 %v669_v23, %s1732_s11  ;;  %v753_v14 = vpack.c.bf16 %v746_v8, %v745_v6  ;;  %v595_v15 = vpack.c.bf16 %v587_v11, %v2035_v48 }
 0x141   : > { %684 = vrot.lane.b32.xlu0 %v668_v27, %s1732_s11  ;;  %v596_v23 = vpack.c.bf16 %v588_v18, %v588_v18 }
 0x142   : > { %v2016_v32 = vmax.f32 %v402_v28, 0.0  ;;  %v2018_v33 = vmax.f32 %v421_v29, 0.0 }
 0x144   : > { %v727_v37 = vpack.c.bf16 %v2018_v33, %v2016_v32  ;;  %v665_v20 = vmul.f32 %v1979_v7, %v2018_v33  ;;  %v807_v26 = vmul.f32 %v1947_v46, %v2016_v32  ;;  %v808_v27 = vmul.f32 %v1961_v63, %v2018_v33 }
 0x145   : > { %v589_v28 = vmul.f32 %v580_v40, %v2016_v32  ;;  %v664_v31 = vmul.f32 %v1984_v12, %v2016_v32  ;;  %v747_v34 = vmul.f32 %v1953_v56, %v2016_v32  ;;  %v748_v35 = vmul.f32 %v1965_v0, %v2018_v33 }
 0x146   : > { %825 = vrot.lane.b32.xlu2 %v813_v36, %s1735_s9  ;;  %731 = vst [vmem:[#allocation2 + $0x90] sm:$0xff] %v727_v37  ;;  %v673_v25 = vpack.c.bf16 %v665_v20, %v665_v20  ;;  %v814_v29 = vpack.c.bf16 %v808_v27, %v807_v26 }
 0x147   : > { %v403_v41 = vpop.f32.mrf.mxu0  ;;  %v422_v43 = vpop.f32.mrf.mxu1  ;;  %v597_v30 = vpack.c.bf16 %v589_v28, %v2035_v48 }
 0x148   : > { %v404_v44 = vadd.f32 %v403_v41, %v1944_v42  ;;  %v423_v45 = vadd.f32 %v422_v43, %v1944_v42  ;;  %919 = vrot.lane.b32.xlu1 %v909_v39, %s1738_s23  ;;  %v670_v42 = vpack.c.bf16 %v662_v47, %v1996_v19  ;;  %v672_v39 = vpack.c.bf16 %v664_v31, %v1996_v19 }
 0x149   : > { %863 = vrot.lane.b32.xlu0 %v726_v22, %s1737_s21  ;;  %v519_v22 = vpack.c.bf16 %v2016_v32, %v1739_v21  ;;  %v906_v41 = vmul.f32 %v2005_v24, %v2018_v33  ;;  %v590_v43 = vmul.f32 %v1973_v4, %v2018_v33 }
 0x14a   : > { %v2037_v49 = vmax.f32 %v404_v44, 0.0  ;;  %v2039_v50 = vmax.f32 %v423_v45, 0.0 }
 0x14c   : > { %v728_v53 = vpack.c.bf16 %v2039_v50, %v2037_v49  ;;  %v2051_v57 = vmul.f32 %v1984_v12, %v2037_v49  ;;  %v2057_v60 = vmul.f32 %v1951_v55, %v2037_v49  ;;  %v2066_v3 = vmul.f32 %v2005_v24, %v2039_v50 }
 0x14d   : > { %v2069_v5 = vmul.f32 %v580_v40, %v2037_v49  ;;  %v809_v36 = vmul.f32 %v1947_v46, %v2037_v49  ;;  %v810_v38 = vmul.f32 %v1961_v63, %v2039_v50  ;;  %v905_v40 = vmul.f32 %v1951_v55, %v2016_v32 }
 0x14e   : > { %688 = vrot.lane.b32.xlu2 %v670_v42, %s1732_s11  ;;  %732 = vst [vmem:[#allocation2 + $0x98] sm:$0xff] %v728_v53  ;;  %v674_v2 = vpack.c.bf16 %v2051_v57, %v1996_v19  ;;  %v913_v9 = vpack.c.bf16 %v2066_v3, %v2057_v60  ;;  %v520_v63 = vpack.c.bf16 %v2018_v33, %v2018_v33  ;;  %v862_v42 = vpop.permute.xlu0 %861 }
 0x14f   : > { %v599_v10 = vpack.c.bf16 %v2069_v5, %v2035_v48  ;;  %v815_v12 = vpack.c.bf16 %v810_v38, %v809_v36  ;;  %v912_v46 = vpack.c.bf16 %v906_v41, %v905_v40  ;;  %v522_v44 = vpack.c.bf16 %v2039_v50, %v2039_v50 }
 0x150   : > { %609 = vrot.lane.b32.xlu1 %v593_v54, %s1731_s8  ;;  %v598_v55 = vpack.c.bf16 %v590_v43, %v590_v43  ;;  %v515_v24 = vpack.c.bf16 %v1955_v61, %v1739_v21  ;;  %v749_v45 = vmul.f32 %v1953_v56, %v2037_v49  ;;  %v750_v47 = vmul.f32 %v1965_v0, %v2039_v50 }
 0x151   : > { %690 = vrot.lane.b32.xlu0 %v671_v58, %s1732_s11  ;;  %v592_v51 = vmul.f32 %v1973_v4, %v2039_v50  ;;  %v517_v56 = vpack.c.bf16 %v1990_v16, %v1739_v21  ;;  %v2145_v0 = vrot.slane %v862_v42, 4  ;;  %v2147_v58 = vpop.permute.xlu1 %441  ;;  %v667_v6 = vmul.f32 %v1979_v7, %v2039_v50 }
 0x152   : > { %v755_v52 = vpack.c.bf16 %v750_v47, %v749_v45  ;;  %v516_v7 = vpack.c.bf16 %v1957_v62, %v1957_v62 }
 0x153   : > { %v600_v54 = vpack.c.bf16 %v592_v51, %v592_v51  ;;  %v675_v18 = vpack.c.bf16 %v667_v6, %v667_v6 }
 0x156   : > { %923 = vrot.lane.b32.xlu2 %v911_v13, %s1738_s23  ;;  %v440_v4 = vpop.permute.xlu0 %439 }
 0x157   : > { %v444_v11 = vsel %vm443_vm6, %v440_v4, %v2147_v58  ;;  %v448_v19 = vmul.f32 0.0, %v440_v4 }
 0x158   : > { %765 = vrot.lane.b32.xlu1 %v753_v14, %s1733_s18  ;;  %v455_v14 = vmul.f32 %v444_v11, %v2037_v49  ;;  %v451_v31 = vmul.f32 %v444_v11, %v1990_v16 }
 0x159   : > { %613 = vrot.lane.b32.xlu0 %v595_v15, %s1731_s8 }
 0x15a   : > { %v463_v57 = vpack.c.bf16 %v455_v14, %v448_v19 }
 0x15e   : > { %539 = vrot.lane.b32.xlu2 %v519_v22, %s1740_s16  ;;  %v824_v22 = vpop.permute.xlu1 %823 }
 0x160   : > { %615 = vrot.lane.b32.xlu1 %v596_v23, %s1731_s8 }
 0x161   : > { %694 = vrot.lane.b32.xlu0 %v673_v25, %s1732_s11  ;;  %v2178_v25 = vrot.slane %v824_v22, 4 }
 0x166   : > { %827 = vrot.lane.b32.xlu2 %v814_v29, %s1735_s9 }
 0x168   : > { %865 = vrot.lane.b32.xlu1 %v727_v37, %s1737_s21  ;;  %v754_v37 = vpack.c.bf16 %v748_v35, %v747_v34 }
 0x169   : > { %617 = vrot.lane.b32.xlu0 %v597_v30, %s1731_s8  ;;  %v454_v30 = vmul.f32 %v2147_v58, %v2018_v33  ;;  %v459_v33 = vpack.c.bf16 %v451_v31, %v448_v19 }
 0x16e   : > { %692 = vrot.lane.b32.xlu2 %v672_v39, %s1732_s11  ;;  %v462_v39 = vpack.c.bf16 %v454_v30, %v454_v30 }
 0x170   : > { %767 = vrot.lane.b32.xlu1 %v754_v37, %s1733_s18 }
 0x171   : > { %829 = vrot.lane.b32.xlu0 %v815_v12, %s1735_s9  ;;  %v449_v12 = vmul.f32 %v444_v11, %v1955_v61 }
 0x173   : > { %v457_v45 = vpack.c.bf16 %v449_v12, %v448_v19 }
 0x176   : > { %867 = vrot.lane.b32.xlu2 %v728_v53, %s1737_s21  ;;  %v521_v53 = vpack.c.bf16 %v2037_v49, %v1739_v21  ;;  %v453_v49 = vmul.f32 %v444_v11, %v2016_v32  ;;  %v450_v21 = vmul.f32 %v2147_v58, %v1957_v62  ;;  %v456_v62 = vmul.f32 %v2147_v58, %v2039_v50 }
 0x178   : > { %925 = vrot.lane.b32.xlu1 %v912_v46, %s1738_s23  ;;  %v461_v23 = vpack.c.bf16 %v453_v49, %v448_v19  ;;  %v458_v26 = vpack.c.bf16 %v450_v21, %v450_v21  ;;  %v464_v3 = vpack.c.bf16 %v456_v62, %v456_v62 }
 0x179   : > { %541 = vrot.lane.b32.xlu0 %v520_v63, %s1740_s16 }
 0x17e   : > { %545 = vrot.lane.b32.xlu2 %v522_v44, %s1740_s16 }
 0x180   : > { %619 = vrot.lane.b32.xlu1 %v598_v55, %s1731_s8 }
 0x181   : > { %531 = vrot.lane.b32.xlu0 %v515_v24, %s1740_s16 }
 0x186   : > { %769 = vrot.lane.b32.xlu2 %v755_v52, %s1733_s18  ;;  %v452_v52 = vmul.f32 %v2147_v58, %v1992_v17  ;;  %s1680_s18 = scalar_lea.hbm %s2368_s7, 96 }
 0x188   : > { %543 = vrot.lane.b32.xlu1 %v521_v53, %s1740_s16  ;;  %v460_v4 = vpack.c.bf16 %v452_v52, %v452_v52 }
 0x189   : > { %623 = vrot.lane.b32.xlu0 %v600_v54, %s1731_s8 }
 0x18e   : > { %535 = vrot.lane.b32.xlu2 %v517_v56, %s1740_s16 }
 0x190   : > { %v860_v1 = vpop.permute.xlu2 %859  ;;  %696 = vrot.lane.b32.xlu1 %v674_v2, %s1732_s11  ;;  %v764_v2 = vpop.permute.xlu0 %763 }
 0x191   : > { %v869_v8 = vrot.slane %v860_v1, 4  ;;  %537 = vrot.lane.b32.xlu0 %v518_v59, %s1740_s16  ;;  %v2197_v36 = vrot.slane %v764_v2, 4 }
 0x193   : > { %v874_v13 = vsel %vm497_vm7, %v869_v8, %v2145_v0 }
 0x194   : > { %v876_v15 = vsel %vm875_vm8, %v860_v1, %v874_v13 }
 0x195   : > { %887 = vst [vmem:[#allocation2 + $0xe0] sm:$0xff] %v876_v15 }
 0x196   : > { %698 = vrot.lane.b32.xlu2 %v675_v18, %s1732_s11 }
 0x198   : > { %v2167_v20 = vpop.permute.xlu2 %611  ;;  %533 = vrot.lane.b32.xlu1 %v516_v7, %s1740_s16  ;;  %v922_v32 = vpop.permute.xlu0 %921 }
 0x199   : > { %485 = vrot.lane.b32.xlu0 %v463_v57, %s1734_s20  ;;  %v2205_v37 = vrot.slane %v922_v32, 4  ;;  %v626_v13 = vrot.slane %v2167_v20, 4 }
 0x19e   : > { %927 = vrot.lane.b32.xlu2 %v913_v9, %s1738_s23  ;;  %s1279_s23 = scalar_lea.hbm %s2368_s7, %s1566_s10 }
 0x19f   : > { %s1282_s12 = sshll.u32 %s1279_s23, 4  ;;  %s1283_s12 = int_to_ptr.hbm [resolvable:$true] %s1282_s12 }
 0x1a0   : > { %v826_v27 = vpop.permute.xlu2 %825  ;;  %481 = vrot.lane.b32.xlu1 %v461_v23, %s1734_s20  ;;  %s1674_s19 = sshra.s32 %s1283_s12, 4  ;;  %s1675_s19 = int_to_ptr.hbm [resolvable:$true] %s1674_s19 }
 0x1a1   : > { %v833_v28 = vrot.slane %v826_v27, 4  ;;  %475 = vrot.lane.b32.xlu0 %v458_v26, %s1734_s20  ;;  %s1676_s15 = scalar_lea.hbm %s1675_s19, 48  ;;  %p1681_p0 = scmp.lt.s32.totalorder %s1675_s19, %s2368_s7 }
 0x1a2   : > { %p1677_p6 = scmp.ne.s32.totalorder %s1675_s19, %s1676_s15  ;;  %p1682_p1 = scmp.lt.s32.totalorder %s1680_s18, %s1676_s15 }
 0x1a3   : > { %v839_v29 = vsel %vm497_vm7, %v833_v28, %v2178_v25 }
 0x1a4   : > { %v840_v60 = vsel %vm579_vm5, %v826_v27, %v839_v29  ;;  %p1678_p9 = pnand %p1677_p6, %p1832_p11  ;;  %p1683_p3 = por %p1682_p1, %p1681_p0 }
 0x1a5   : > { %850 = vst [vmem:[#allocation2 + $0xc8] sm:$0xff] %v840_v60 }
 0x1a6   : > { %621 = vrot.lane.b32.xlu2 %v599_v10, %s1731_s8  ;;  %p1679_p13 = pneg %p1678_p9 }
 0x1a8   : > { %v2191_v9 = vpop.permute.xlu2 %688  ;;  %487 = vrot.lane.b32.xlu1 %v464_v3, %s1734_s20  ;;  %p1684_p4 = pnand %p1683_p3, %p1679_p13 }
 0x1a9   : > { %v702_v19 = vrot.slane %v2191_v9, 4 }
 0x1aa   : > { %v822_v50 = vpop.permute.xlu1 %821 }
 0x1ab   : > { %v831_v34 = vrot.slane %v822_v50, 4  ;;  %v762_v35 = vpop.permute.xlu0 %761 }
 0x1ac   : > { %v771_v38 = vrot.slane %v762_v35, 4 }
 0x1ad   : > { %v836_v48 = vsel %vm497_vm7, %v831_v34, %v2178_v25 }
 0x1ae   : > { %v838_v5 = vsel %vm579_vm5, %v822_v50, %v836_v48  ;;  %v776_v10 = vsel %vm497_vm7, %v771_v38, %v2197_v36  ;;  %483 = vrot.lane.b32.xlu2 %v462_v39, %s1734_s20 }
 0x1af   : > { %849 = vst [vmem:[#allocation2 + $0xc0] sm:$0xff] %v838_v5  ;;  %v778_v16 = vsel %vm654_vm3, %v762_v35, %v776_v10 }
 0x1b0   : > { %789 = vst [vmem:[#allocation2 + $0xa0] sm:$0xff] %v778_v16  ;;  %v924_v40 = vpop.permute.xlu2 %923  ;;  %477 = vrot.lane.b32.xlu1 %v459_v33, %s1734_s20 }
 0x1b1   : > { %v931_v41 = vrot.slane %v924_v40, 4 }
 0x1b2   : > { %v687_v46 = vpop.permute.xlu1 %686 }
 0x1b3   : > { %v937_v63 = vsel %vm497_vm7, %v931_v41, %v2205_v37  ;;  %v701_v43 = vrot.slane %v687_v46, 4  ;;  %v685_v44 = vpop.permute.xlu0 %684 }
 0x1b4   : > { %v938_v55 = vsel %vm443_vm6, %v924_v40, %v937_v63  ;;  %v700_v24 = vrot.slane %v685_v44, 4 }
 0x1b5   : > { %948 = vst [vmem:[#allocation2 + $0x108] sm:$0xff] %v938_v55 }
 0x1b6   : > { %v708_v47 = vsel %vm497_vm7, %v700_v24, %v701_v43  ;;  %473 = vrot.lane.b32.xlu2 %v457_v45, %s1734_s20 }
 0x1b7   : > { %v710_v61 = vsel %vm709_vm2, %v685_v44, %v708_v47 }
 0x1b8   : > { %721 = vst [vmem:[#allocation2 + $0x60] sm:$0xff] %v710_v61  ;;  %v2216_v51 = vpop.permute.xlu2 %539 }
 0x1ba   : > { %v920_v42 = vpop.permute.xlu1 %919 }
 0x1bb   : > { %v929_v53 = vrot.slane %v920_v42, 4  ;;  %v864_v54 = vpop.permute.xlu0 %863 }
 0x1bc   : > { %v871_v56 = vrot.slane %v864_v54, 4 }
 0x1bd   : > { %v934_v59 = vsel %vm497_vm7, %v929_v53, %v2205_v37 }
 0x1be   : > { %v936_v1 = vsel %vm443_vm6, %v920_v42, %v934_v59  ;;  %v877_v6 = vsel %vm497_vm7, %v871_v56, %v2145_v0  ;;  %479 = vrot.lane.b32.xlu2 %v460_v4, %s1734_s20 }
 0x1bf   : > { %947 = vst [vmem:[#allocation2 + $0x100] sm:$0xff] %v936_v1  ;;  %v878_v8 = vsel %vm875_vm8, %v864_v54, %v877_v6  ;;  %v1491_v6 = vld [vmem:[#allocation2 + $0xe0] sm:$0xf] }
 0x1c0   : > { %888 = vst [vmem:[#allocation2 + $0xe8] sm:$0xff] %v878_v8  ;;  %v828_v17 = vpop.permute.xlu2 %827 }
 0x1c1   : > { %v834_v58 = vrot.slane %v828_v17, 4 }
 0x1c2   : > { %v610_v11 = vpop.permute.xlu1 %609 }
 0x1c3   : > { %v841_v14 = vsel %vm497_vm7, %v834_v58, %v2178_v25  ;;  %v691_v15 = vpop.permute.xlu0 %690  ;;  %v625_v18 = vrot.slane %v610_v11, 4 }
 0x1c4   : > { %v842_v7 = vsel %vm579_vm5, %v828_v17, %v841_v14  ;;  %v703_v57 = vrot.slane %v691_v15, 4 }
 0x1c5   : > { %851 = vst [vmem:[#allocation2 + $0xd0] sm:$0xff] %v842_v7  ;;  %v633_v2 = vsel %vm497_vm7, %v625_v18, %v626_v13 }
 0x1c6   : > { %v711_v49 = vsel %vm497_vm7, %v702_v19, %v703_v57  ;;  %v635_v21 = vsel %vm634_vm1, %v610_v11, %v633_v2  ;;  %v1475_v2 = vld [vmem:[#allocation2 + $0xc0] sm:$0xf] }
 0x1c7   : > { %v712_v20 = vsel %vm709_vm2, %v2191_v9, %v711_v49  ;;  %646 = vst [vmem:[#allocation2 + $0x40] sm:$0xff] %v635_v21  ;;  %v1558_v59 = vld [vmem:[#allocation2 + $0xe4] sm:$0xf0] }
 0x1c8   : > { %722 = vst [vmem:[#allocation2 + $0x68] sm:$0xff] %v712_v20  ;;  %v693_v22 = vpop.permute.xlu2 %692  ;;  %v1492_v17 = vor.u32 %v1558_v59, %v1491_v6 }
 0x1c9   : > { %v704_v31 = vrot.slane %v693_v22, 4 }
 0x1ca   : > { %v766_v23 = vpop.permute.xlu1 %765 }
 0x1cb   : > { %v614_v26 = vpop.permute.xlu0 %613  ;;  %v773_v27 = vrot.slane %v766_v23, 4 }
 0x1cc   : > { %v627_v3 = vrot.slane %v614_v26, 4  ;;  %v1483_v18 = vld [vmem:[#allocation2 + $0xd0] sm:$0xf] }
 0x1cd   : > { %v779_v28 = vsel %vm497_vm7, %v773_v27, %v2197_v36 }
 0x1ce   : > { %v780_v32 = vsel %vm654_vm3, %v766_v23, %v779_v28  ;;  %v1554_v23 = vld [vmem:[#allocation2 + $0xc4] sm:$0xf0] }
 0x1cf   : > { %790 = vst [vmem:[#allocation2 + $0xa8] sm:$0xff] %v780_v32 }
 0x1d0   : > { %v868_v62 = vpop.permute.xlu2 %867 }
 0x1d1   : > { %v873_v29 = vrot.slane %v868_v62, 4 }
 0x1d2   : > { %v616_v60 = vpop.permute.xlu1 %615 }
 0x1d3   : > { %v881_v30 = vsel %vm497_vm7, %v873_v29, %v2145_v0  ;;  %v695_v9 = vpop.permute.xlu0 %694  ;;  %v628_v50 = vrot.slane %v616_v60, 4 }
 0x1d4   : > { %v882_v34 = vsel %vm875_vm8, %v868_v62, %v881_v30  ;;  %v705_v35 = vrot.slane %v695_v9, 4 }
 0x1d5   : > { %890 = vst [vmem:[#allocation2 + $0xf8] sm:$0xff] %v882_v34  ;;  %v636_v38 = vsel %vm497_vm7, %v627_v3, %v628_v50 }
 0x1d6   : > { %v713_v39 = vsel %vm497_vm7, %v704_v31, %v705_v35  ;;  %v637_v48 = vsel %vm634_vm1, %v614_v26, %v636_v38  ;;  %v1476_v26 = vor.u32 %v1554_v23, %v1475_v2  ;;  %v1550_v3 = vld [vmem:[#allocation2 + $0xa4] sm:$0xf0]  ;;  %v1459_v35 = vld [vmem:[#allocation2 + $0xa0] sm:$0xf] }
 0x1d7   : > { %v714_v5 = vsel %vm709_vm2, %v693_v22, %v713_v39  ;;  %647 = vst [vmem:[#allocation2 + $0x48] sm:$0xff] %v637_v48  ;;  %v1460_v39 = vor.u32 %v1550_v3, %v1459_v35 }
 0x1d8   : > { %723 = vst [vmem:[#allocation2 + $0x70] sm:$0xff] %v714_v5  ;;  %v2247_v10 = vpop.permute.xlu2 %545  ;;  %v1548_v5 = vld [vmem:[#allocation2 + $0x94] sm:$0xf0] }
 0x1d9   : > { %v554_v9 = vrot.slane %v2247_v10, 4  ;;  %v2283_v10 = vld [vmem:[%s2367_s6] sm:$0xff] }
 0x1da   : > { %v866_v33 = vpop.permute.xlu1 %865 }
 0x1db   : > { %v618_v16 = vpop.permute.xlu0 %617  ;;  %v872_v12 = vrot.slane %v866_v33, 4 }
 0x1dc   : > { %v1560_v53 = vld [vmem:[#allocation2 + $0xf4] sm:$0xf0]  ;;  %v629_v21 = vrot.slane %v618_v16, 4 }
 0x1dd   : > { %v879_v40 = vsel %vm497_vm7, %v872_v12, %v2145_v0 }
 0x1de   : > { %v880_v41 = vsel %vm875_vm8, %v866_v33, %v879_v40 }
 0x1df   : > { %889 = vst [vmem:[#allocation2 + $0xf0] sm:$0xff] %v880_v41 }
 0x1e0   : > { %v770_v46 = vpop.permute.xlu2 %769 }
 0x1e1   : > { %v775_v63 = vrot.slane %v770_v46, 4 }
 0x1e2   : > { %v768_v43 = vpop.permute.xlu1 %767 }
 0x1e3   : > { %v783_v44 = vsel %vm497_vm7, %v775_v63, %v2197_v36  ;;  %v830_v55 = vpop.permute.xlu0 %829  ;;  %v774_v24 = vrot.slane %v768_v43, 4  ;;  %v992_v63 = vunpack.c.h.b16 %v2283_v10 }
 0x1e4   : > { %v784_v45 = vsel %vm654_vm3, %v770_v46, %v783_v44  ;;  %v835_v47 = vrot.slane %v830_v55, 4  ;;  %v1546_v46 = vld [vmem:[#allocation2 + $0x84] sm:$0xf0]  ;;  %v1443_v44 = vld [vmem:[#allocation2 + $0x80] sm:$0xf] }
 0x1e5   : > { %792 = vst [vmem:[#allocation2 + $0xb8] sm:$0xff] %v784_v45  ;;  %v781_v61 = vsel %vm497_vm7, %v774_v24, %v2197_v36 }
 0x1e6   : > { %v843_v0 = vsel %vm497_vm7, %v835_v47, %v2178_v25  ;;  %v782_v52 = vsel %vm654_vm3, %v768_v43, %v781_v61  ;;  %v1499_v42 = vld [vmem:[#allocation2 + $0xf0] sm:$0xf]  ;;  %v551_v25 = vrot.slane %v2216_v51, 4 }
 0x1e7   : > { %v844_v54 = vsel %vm579_vm5, %v830_v55, %v843_v0  ;;  %791 = vst [vmem:[#allocation2 + $0xb0] sm:$0xff] %v782_v52  ;;  %v1500_v56 = vor.u32 %v1560_v53, %v1499_v42  ;;  %v952_v52 = vld [vmem:[%s2367_s6 + $0x8] sm:$0xf] }
 0x1e8   : > { %852 = vst [vmem:[#allocation2 + $0xd8] sm:$0xff] %v844_v54  ;;  %v2261_v4 = vpop.permute.xlu2 %535 }
 0x1e9   : > { %1196 = vmatpush.bf16.msra.mxu3 %v1500_v56  ;;  %v549_v42 = vrot.slane %v2261_v4, 4  ;;  %v1444_v56 = vor.u32 %v1546_v46, %v1443_v44 }
 0x1ea   : > { %v926_v1 = vpop.permute.xlu1 %925 }
 0x1eb   : > { %v542_v8 = vpop.permute.xlu0 %541  ;;  %v932_v36 = vrot.slane %v926_v1, 4 }
 0x1ec   : > { %v552_v58 = vrot.slane %v542_v8, 4  ;;  %v1552_v32 = vld [vmem:[#allocation2 + $0xb4] sm:$0xf0] }
 0x1ed   : > { %v939_v11 = vsel %vm497_vm7, %v932_v36, %v2205_v37  ;;  %1197 = vmatpush.bf16.msra.mxu3 %v1492_v17  ;;  %v2293_v17 = vpack.c.b16 %v992_v63, %v992_v63 }
 0x1ee   : > { %v560_v13 = vsel %vm497_vm7, %v551_v25, %v552_v58  ;;  %v940_v14 = vsel %vm443_vm6, %v926_v1, %v939_v11  ;;  %v1467_v28 = vld [vmem:[#allocation2 + $0xb0] sm:$0xf]  ;;  %v1507_v11 = vld [vmem:[#allocation2 + $0x100] sm:$0xf] }
 0x1ef   : > { %v561_v15 = vsel %vm380_vm0, %v2216_v51, %v560_v13  ;;  %949 = vst [vmem:[#allocation2 + $0x110] sm:$0xff] %v940_v14  ;;  %v1556_v19 = vld [vmem:[#allocation2 + $0xd4] sm:$0xf0]  ;;  %v1468_v29 = vor.u32 %v1552_v32, %v1467_v28  ;;  %v1561_v13 = vld [vmem:[#allocation2 + $0x104] sm:$0xf]  ;;  %v993_v14 = vunpack.c.l.b16 %v952_v52 }
 0x1f0   : > { %570 = vst [vmem:[#allocation2 + $0x30] sm:$0xff] %v561_v15  ;;  %v699_v7 = vpop.permute.xlu2 %698  ;;  %v1484_v57 = vor.u32 %v1556_v19, %v1483_v18  ;;  %v1559_v18 = vld [vmem:[#allocation2 + $0xf4] sm:$0xf]  ;;  %v1485_v35 = vld [vmem:[#allocation2 + $0xd8] sm:$0xf0] }
 0x1f1   : > { %v707_v24 = vrot.slane %v699_v7, 4  ;;  %v1562_v7 = vld [vmem:[#allocation2 + $0x104] sm:$0xf0] }
 0x1f2   : > { %1198 = vmatpush.bf16.msra.mxu3 %v1484_v57  ;;  %v620_v49 = vpop.permute.xlu1 %619  ;;  %v1509_v57 = vld [vmem:[#allocation2 + $0x108] sm:$0xf0]  ;;  %v1508_v2 = vor.u32 %v1562_v7, %v1507_v11 }
 0x1f3   : > { %v630_v20 = vrot.slane %v620_v49, 4  ;;  %v2270_v22 = vpop.permute.xlu0 %531  ;;  %v1512_v49 = vor.u32 %v1561_v13, %v1509_v57  ;;  %v1411_v13 = vld [vmem:[#allocation2 + $0x40] sm:$0xf]  ;;  %v1461_v57 = vld [vmem:[#allocation2 + $0xa8] sm:$0xf0] }
 0x1f5   : > { %v638_v27 = vsel %vm497_vm7, %v629_v21, %v630_v20  ;;  %v1501_v21 = vld [vmem:[#allocation2 + $0xf8] sm:$0xf0] }
 0x1f6   : > { %v639_v51 = vsel %vm634_vm1, %v618_v16, %v638_v27  ;;  %1199 = vmatpush.bf16.msra.mxu3 %v1476_v26  ;;  %v1515_v55 = vld [vmem:[#allocation2 + $0x110] sm:$0xf]  ;;  %v1563_v0 = vld [vmem:[#allocation2 + $0x114] sm:$0xf]  ;;  %v1504_v23 = vor.u32 %v1559_v18, %v1501_v21  ;;  %v2300_v26 = vpack.c.b16 %v993_v14, %v993_v14  ;;  %v547_v27 = vrot.slane %v2270_v22, 4 }
 0x1f7   : > { %648 = vst [vmem:[#allocation2 + $0x50] sm:$0xff] %v639_v51  ;;  %v1493_v51 = vld [vmem:[#allocation2 + $0xe8] sm:$0xf0]  ;;  %v1537_v14 = vld [vmem:[#allocation2 + $0x44] sm:$0xf] }
 0x1f8   : > { %v928_v62 = vpop.permute.xlu2 %927 }
 0x1f9   : > { %v933_v60 = vrot.slane %v928_v62, 4 }
 0x1fa   : > { %1200 = vmatpush.bf16.msra.mxu3 %v1468_v29  ;;  %v544_v30 = vpop.permute.xlu1 %543  ;;  %v1435_v29 = vld [vmem:[#allocation2 + $0x70] sm:$0xf] }
 0x1fb   : > { %v941_v50 = vsel %vm497_vm7, %v933_v60, %v2205_v37  ;;  %v553_v31 = vrot.slane %v544_v30, 4  ;;  %v624_v34 = vpop.permute.xlu0 %623  ;;  %v1451_v37 = vld [vmem:[#allocation2 + $0x90] sm:$0xf] }
 0x1fc   : > { %v942_v38 = vsel %vm443_vm6, %v928_v62, %v941_v50  ;;  %v1452_v12 = vor.u32 %v1548_v5, %v1451_v37  ;;  %v632_v40 = vrot.slane %v624_v34, 4  ;;  %v1557_v62 = vld [vmem:[#allocation2 + $0xe4] sm:$0xf]  ;;  %v1555_v5 = vld [vmem:[#allocation2 + $0xd4] sm:$0xf] }
 0x1fd   : > { %950 = vst [vmem:[#allocation2 + $0x118] sm:$0xff] %v942_v38  ;;  %v562_v48 = vsel %vm497_vm7, %v553_v31, %v554_v9  ;;  %v1496_v3 = vor.u32 %v1557_v62, %v1493_v51  ;;  %v1543_v9 = vld [vmem:[#allocation2 + $0x74] sm:$0xf]  ;;  %v1542_v38 = vld [vmem:[#allocation2 + $0x64] sm:$0xf0] }
 0x1fe   : > { %v563_v33 = vsel %vm380_vm0, %v544_v30, %v562_v48  ;;  %1201 = vmatpush.bf16.msra.mxu3 %v1460_v39  ;;  %v1429_v39 = vld [vmem:[#allocation2 + $0x68] sm:$0xf0]  ;;  %v1427_v37 = vld [vmem:[#allocation2 + $0x60] sm:$0xf]  ;;  %v1453_v62 = vld [vmem:[#allocation2 + $0x98] sm:$0xf0] }
 0x1ff   : > { %571 = vst [vmem:[#allocation2 + $0x38] sm:$0xff] %v563_v33  ;;  %v1428_v46 = vor.u32 %v1542_v38, %v1427_v37 }
 0x200   : > { %v622_v16 = vpop.permute.xlu2 %621 }
 0x201   : > { %v631_v41 = vrot.slane %v622_v16, 4 }
 0x202   : > { %1202 = vmatpush.bf16.msra.mxu3 %v1452_v12  ;;  %v697_v43 = vpop.permute.xlu1 %696 }
 0x203   : > { %v640_v45 = vsel %vm497_vm7, %v631_v41, %v632_v40  ;;  %v706_v47 = vrot.slane %v697_v43, 4  ;;  %v538_v61 = vpop.permute.xlu0 %537 }
 0x204   : > { %v641_v53 = vsel %vm634_vm1, %v622_v16, %v640_v45  ;;  %v550_v54 = vrot.slane %v538_v61, 4  ;;  %v1564_v59 = vld [vmem:[#allocation2 + $0x114] sm:$0xf0]  ;;  %v1517_v1 = vld [vmem:[#allocation2 + $0x118] sm:$0xf0] }
 0x205   : > { %649 = vst [vmem:[#allocation2 + $0x58] sm:$0xff] %v641_v53  ;;  %v715_v6 = vsel %vm497_vm7, %v706_v47, %v707_v24  ;;  %v1516_v8 = vor.u32 %v1564_v59, %v1515_v55  ;;  %v1520_v36 = vor.u32 %v1563_v0, %v1517_v1  ;;  %v1541_v16 = vld [vmem:[#allocation2 + $0x64] sm:$0xf]  ;;  %v1477_v61 = vld [vmem:[#allocation2 + $0xc8] sm:$0xf0] }
 0x206   : > { %v716_v25 = vsel %vm709_vm2, %v697_v43, %v715_v6  ;;  %v558_v58 = vsel %vm497_vm7, %v549_v42, %v550_v54  ;;  %1203 = vmatpush.bf16.msra.mxu3 %v1444_v56  ;;  %v1432_v63 = vor.u32 %v1541_v16, %v1429_v39  ;;  %v1553_v43 = vld [vmem:[#allocation2 + $0xc4] sm:$0xf]  ;;  %v1419_v53 = vld [vmem:[#allocation2 + $0x50] sm:$0xf]  ;;  %v1539_v54 = vld [vmem:[#allocation2 + $0x54] sm:$0xf] }
 0x207   : > { %724 = vst [vmem:[#allocation2 + $0x78] sm:$0xff] %v716_v25  ;;  %v559_v15 = vsel %vm380_vm0, %v2261_v4, %v558_v58  ;;  %1215 = vmatpush.bf16.msra.mxu2 %v1516_v8  ;;  %v1480_v42 = vor.u32 %v1553_v43, %v1477_v61  ;;  %v1551_v6 = vld [vmem:[#allocation2 + $0xb4] sm:$0xf]  ;;  %v1538_v8 = vld [vmem:[#allocation2 + $0x44] sm:$0xf0]  ;;  %v991_v43 = vunpack.c.l.b16 %v2283_v10 }
 0x208   : > { %569 = vst [vmem:[#allocation2 + $0x28] sm:$0xff] %v559_v15  ;;  %v484_v19 = vpop.permute.xlu2 %483  ;;  %v1469_v25 = vld [vmem:[#allocation2 + $0xb8] sm:$0xf0] }
 0x209   : > { %1204 = vmatmul.bf16.vlgmr.msra.gmra.mxu3 %v2293_v17  ;;  %v494_v12 = vrot.slane %v484_v19, 4  ;;  %v1472_v11 = vor.u32 %v1551_v6, %v1469_v25  ;;  %v1412_v19 = vor.u32 %v1538_v8, %v1411_v13 }
 0x20a   : > { %1254 = vmatpush.bf16.msrb.mxu3 %v1520_v36  ;;  %v534_v20 = vpop.permute.xlu1 %533  ;;  %v1413_v36 = vld [vmem:[#allocation2 + $0x48] sm:$0xf0] }
 0x20b   : > { %v548_v28 = vrot.slane %v534_v20, 4  ;;  %v2303_v4 = vpop.permute.xlu0 %485  ;;  %1216 = vmatpush.bf16.msra.mxu2 %v1508_v2  ;;  %v1416_v7 = vor.u32 %v1537_v14, %v1413_v36  ;;  %v1536_v2 = vld [vmem:[#allocation2 + $0x34] sm:$0xf0]  ;;  %v1549_v20 = vld [vmem:[#allocation2 + $0xa4] sm:$0xf] }
 0x20c   : > { %v1540_v24 = vld [vmem:[#allocation2 + $0x54] sm:$0xf0]  ;;  %v1421_v45 = vld [vmem:[#allocation2 + $0x58] sm:$0xf0]  ;;  %v495_v15 = vrot.slane %v2303_v4, 4 }
 0x20d   : > { %v555_v32 = vsel %vm497_vm7, %v547_v27, %v548_v28  ;;  %v1420_v59 = vor.u32 %v1540_v24, %v1419_v53  ;;  %v1424_v1 = vor.u32 %v1539_v54, %v1421_v45  ;;  %v1464_v27 = vor.u32 %v1549_v20, %v1461_v57  ;;  %v1403_v28 = vld [vmem:[#allocation2 + $0x30] sm:$0xf] }
 0x20e   : > { %1255 = vmatpush.bf16.msrb.mxu3 %v1512_v49  ;;  %v557_v60 = vsel %vm380_vm0, %v2270_v22, %v555_v32  ;;  %v1544_v30 = vld [vmem:[#allocation2 + $0x74] sm:$0xf0]  ;;  %v1437_v50 = vld [vmem:[#allocation2 + $0x78] sm:$0xf0]  ;;  %1521 = vmatmul.msk.bf16.vlgmr.msra.gmra.mxu2 %vm1179_vm9, %v2300_v26  ;;  %v1488_v22 = vor.u32 %v1555_v5, %v1485_v35  ;;  %v1404_v51 = vor.u32 %v1536_v2, %v1403_v28 }
 0x20f   : > { %1235 = vmatpush.bf16.msrb.mxu2 %v1504_v23  ;;  %568 = vst [vmem:[#allocation2 + $0x20] sm:$0xff] %v557_v60  ;;  %v1436_v31 = vor.u32 %v1544_v30, %v1435_v29  ;;  %v1440_v34 = vor.u32 %v1543_v9, %v1437_v50  ;;  %v1405_v49 = vld [vmem:[#allocation2 + $0x38] sm:$0xf0]  ;;  %v1547_v30 = vld [vmem:[#allocation2 + $0x94] sm:$0xf] }
 0x210   : > { %v474_v48 = vpop.permute.xlu2 %473  ;;  %v1456_v50 = vor.u32 %v1547_v30, %v1453_v62 }
 0x211   : > { %1183 = vmatpush.bf16.msrb.mxu0 %v1436_v31  ;;  %1222 = vmatpush.bf16.msrb.mxu1 %v1440_v34  ;;  %v489_v44 = vrot.slane %v474_v48, 4  ;;  %v1534_v31 = vld [vmem:[#allocation2 + $0x24] sm:$0xf0]  ;;  %v1397_v34 = vld [vmem:[#allocation2 + $0x28] sm:$0xf0] }
 0x212   : > { %v482_v33 = vpop.permute.xlu1 %481 }
 0x213   : > { %1236 = vmatpush.bf16.msrb.mxu2 %v1496_v3  ;;  %v493_v40 = vrot.slane %v482_v33, 4  ;;  %v476_v41 = vpop.permute.xlu0 %475 }
 0x214   : > { %v490_v55 = vrot.slane %v476_v41, 4 }
 0x215   : > { %v503_v47 = vsel %vm497_vm7, %v493_v40, %v494_v12  ;;  %1184 = vmatpush.bf16.msrb.mxu0 %v1428_v46  ;;  %1223 = vmatpush.bf16.msrb.mxu1 %v1432_v63 }
 0x216   : > { %v504_v0 = vsel %vm499_vm4, %v482_v33, %v503_v47  ;;  %v498_v52 = vsel %vm497_vm7, %v489_v44, %v490_v55  ;;  %v1395_v60 = vld [vmem:[#allocation2 + $0x20] sm:$0xf]  ;;  %v1533_v3 = vld [vmem:[#allocation2 + $0x24] sm:$0xf] }
 0x217   : > { %1237 = vmatpush.bf16.msrb.mxu2 %v1488_v22  ;;  %513 = vst [vmem:[#allocation2 + $0x10] sm:$0xff] %v504_v0  ;;  %v500_v56 = vsel %vm499_vm4, %v474_v48, %v498_v52  ;;  %v1396_v38 = vor.u32 %v1534_v31, %v1395_v60  ;;  %v1400_v39 = vor.u32 %v1533_v3, %v1397_v34  ;;  %v1445_v48 = vld [vmem:[#allocation2 + $0x88] sm:$0xf0]  ;;  %v1545_v33 = vld [vmem:[#allocation2 + $0x84] sm:$0xf] }
 0x218   : > { %511 = vst [vmem:[#allocation2] sm:$0xff] %v500_v56  ;;  %v480_v29 = vpop.permute.xlu2 %479  ;;  %v1448_v16 = vor.u32 %v1545_v33, %v1445_v48  ;;  %v994_v0 = vpack.c.b16 %v991_v43, %v991_v43 }
 0x219   : > { %1185 = vmatpush.bf16.msrb.mxu0 %v1420_v59  ;;  %1224 = vmatpush.bf16.msrb.mxu1 %v1424_v1  ;;  %v492_v35 = vrot.slane %v480_v29, 4 }
 0x21a   : > { %v488_v58 = vpop.permute.xlu1 %487  ;;  %1522 = vmatmul.msk.bf16.vlgmr.msrb.gmra.mxu3 %vm1179_vm9, %v2300_v26  ;;  %v1535_v26 = vld [vmem:[#allocation2 + $0x34] sm:$0xf] }
 0x21b   : > { %1238 = vmatpush.bf16.msrb.mxu2 %v1480_v42  ;;  %v496_v18 = vrot.slane %v488_v58, 4  ;;  %v1408_v32 = vor.u32 %v1535_v26, %v1405_v49 }
 0x21d   : > { %v505_v21 = vsel %vm497_vm7, %v495_v15, %v496_v18  ;;  %1186 = vmatpush.bf16.msrb.mxu0 %v1412_v19  ;;  %1225 = vmatpush.bf16.msrb.mxu1 %v1416_v7 }
 0x21e   : > { %v506_v23 = vsel %vm499_vm4, %v2303_v4, %v505_v21  ;;  %v1387_v22 = vld [vmem:[#allocation2 + $0x10] sm:$0xf]  ;;  %v1531_v40 = vld [vmem:[#allocation2 + $0x14] sm:$0xf] }
 0x21f   : > { %1239 = vmatpush.bf16.msrb.mxu2 %v1472_v11  ;;  %514 = vst [vmem:[#allocation2 + $0x18] sm:$0xff] %v506_v23  ;;  %v1379_v44 = vld [vmem:[#allocation2] sm:$0xf]  ;;  %v1529_v24 = vld [vmem:[#allocation2 + $0x4] sm:$0xf] }
 0x221   : > { %1187 = vmatpush.bf16.msrb.mxu0 %v1404_v51  ;;  %1226 = vmatpush.bf16.msrb.mxu1 %v1408_v32 }
 0x222   : > { %v478_v9 = vpop.permute.xlu1 %477 }
 0x223   : > { %1240 = vmatpush.bf16.msrb.mxu2 %v1464_v27  ;;  %v491_v4 = vrot.slane %v478_v9, 4 }
 0x225   : > { %v501_v5 = vsel %vm497_vm7, %v491_v4, %v492_v35  ;;  %1188 = vmatpush.bf16.msrb.mxu0 %v1396_v38  ;;  %1227 = vmatpush.bf16.msrb.mxu1 %v1400_v39 }
 0x226   : > { %v502_v37 = vsel %vm499_vm4, %v478_v9, %v501_v5  ;;  %v1532_v12 = vld [vmem:[#allocation2 + $0x14] sm:$0xf0]  ;;  %v1389_v41 = vld [vmem:[#allocation2 + $0x18] sm:$0xf0] }
 0x227   : > { %1241 = vmatpush.bf16.msrb.mxu2 %v1456_v50  ;;  %512 = vst [vmem:[#allocation2 + $0x8] sm:$0xff] %v502_v37  ;;  %v1388_v46 = vor.u32 %v1532_v12, %v1387_v22  ;;  %v1392_v63 = vor.u32 %v1531_v40, %v1389_v41 }
 0x229   : > { %1189 = vmatpush.bf16.msrb.mxu0 %v1388_v46  ;;  %1228 = vmatpush.bf16.msrb.mxu1 %v1392_v63 }
 0x22b   : > { %1242 = vmatpush.bf16.msrb.mxu2 %v1448_v16 }
 0x22e   : > { %1243 = vmatmul.bf16.vlgmr.msrb.gmra.mxu2 %v2293_v17  ;;  %v1530_v55 = vld [vmem:[#allocation2 + $0x4] sm:$0xf0]  ;;  %v1381_v45 = vld [vmem:[#allocation2 + $0x8] sm:$0xf0] }
 0x22f   : > { %v1380_v47 = vor.u32 %v1530_v55, %v1379_v44  ;;  %v1384_v61 = vor.u32 %v1529_v24, %v1381_v45 }
 0x231   : > { %1190 = vmatpush.bf16.msrb.mxu0 %v1380_v47  ;;  %1229 = vmatpush.bf16.msrb.mxu1 %v1384_v61 }
 0x234   : > { %1191 = vmatmul.bf16.vlgmr.msrb.gmra.mxu0 %v994_v0  ;;  %1230 = vmatmul.bf16.vlgmr.msrb.gmra.mxu1 %v994_v0 }
 0x28c   : > { %v1205_v52 = vpop.f32.mrf.mxu3 }
 0x291   : > { %v1218_v42 = vpop.f32.mrf.mxu2 }
 0x294   : > { %v1207_v53 = vpop.f32.mrf.mxu3 }
 0x299   : > { %v1220_v54 = vpop.f32.mrf.mxu2 }
 0x29d   : > { %v1257_v17 = vpop.f32.mrf.mxu3 }
 0x2a5   : > { %v1259_v10 = vpop.f32.mrf.mxu3 }
 0x2b1   : > { %v1244_v56 = vpop.f32.mrf.mxu2  ;;  %v1192_v59 = vpop.f32.mrf.mxu0 }
 0x2b2   : > { %v1231_v1 = vpop.f32.mrf.mxu1  ;;  %v1206_v6 = vadd.f32 %v1205_v52, %v1192_v59 }
 0x2b3   : > { %v1245_v8 = vadd.f32 %v1244_v56, %v1231_v1 }
 0x2b4   : > { %v1219_v36 = vadd.f32 %v1218_v42, %v1206_v6 }
 0x2b5   : > { %v1258_v25 = vadd.f32 %v1257_v17, %v1245_v8 }
 0x2b6   : > { %1261 = vst [vmem:[%s1902_s29] sm:$0xff] %v1219_v36 }
 0x2b7   : > { %1262 = vst [vmem:[%s1902_s29 + $0x8] sm:$0xff] %v1258_v25 }
 0x2b9   : > { %v1246_v58 = vpop.f32.mrf.mxu2 }
 0x2ba   : > { %1687 = shalt.err (!%p1684_p4)
}
 0x2bb   : > { %s1741_s22 = smov 256   ;;  %v1194_v11 = vpop.f32.mrf.mxu0  ;;  %v1233_v13 = vpop.f32.mrf.mxu1 }
 0x2bc   : > { %1569 = dma.vmem_to_hbm [thread:$0]  (%p1832_p11), %s1281_s17, 768, %s1283_s12, %s1268_s28, %s1741_s22, %s1741_s22, %s1740_s16  }
 0x2bd PF: > { %s1297_s29 = sand.u32 1, %s1714_s24   ;;  %p2375_p7 = scmp.ge.s32.totalorder %s1726_s27, 2 }
 0x2be   : > { %s1298_s9 = scalar_lea.sflag [#allocation5], %s1297_s29 }
 0x2bf   : > { %p1576_p5 = pnand %p2375_p7, %p1836_p12 }
 0x2c1   : > { %p1577_p8 = pneg %p1576_p5 }
 0x2c3   : > { %1709 = dma.done.wait (%p1577_p8), %s1298_s9, 768  }
 0x2c4   : > { %1711 = vsyncadd (%p1577_p8), %s1298_s9, 4294966528  ;;  %s2376_s13 = sld [smem:[#allocation9_spill]]  ;;  %p20_p11 = scmp.ge.s32.totalorder %s1807_s30, 4  }
 0x2c5   : > { %s2377_s24 = smov %s1718_s25  ;;  %s2378_s25 = smov %s1722_s26 }
 0x2c6   : > { %s2380_s27 = smov %s1807_s30  ;;  %22 = sbr.rel (!%p20_p11) target bundleno = 5 (0x5), region = 94 }
 0x2ca   : > { %s2379_s26 = smov %s2376_s13 }
 0x2cb   :  { %1304 = vsyncpa [#allocation4], 1 }
 0x2cc   :  { %1306 = vsyncpa [#allocation4 + $0x1], 1 }
 0x2cd   :  { %1307 = vsyncpa [#allocation5], 1 }
 0x2ce   :  { %1309 = vsyncpa [#allocation5 + $0x1], 1 }

</bundles_post_ra>
